<compile_context>
chip_gen: v5e
topology: v5e:2x2
jax: 0.10.0
libtpu: 0.0.40
codegen_flags: <defaults>
</compile_context>

<pallas_src>
import jax
import jax.numpy as jnp
from jax.experimental import pallas as pl
from jax.experimental.pallas import tpu as pltpu


def _round_up(x, m):
    return ((x + m - 1) // m) * m


def _vnlinear_kernel(vec_ref, scal_ref, wv_ref, ws_ref, out_vec_ref, out_scal_ref):
    # vec_ref : (TM, P*2C)            lane-packed, P logical rows per physical row
    # wv_ref  : (P*2C, P*2*dim_out)   block-diagonal fused (orth-concat folded) weight
    # scal_ref: (TM, P*S_in)
    # ws_ref  : (P*S_in, P*S_out)     block-diagonal scalar weight
    out_vec_ref[...] = jnp.dot(
        vec_ref[...], wv_ref[...], preferred_element_type=jnp.float32
    ).astype(out_vec_ref.dtype)
    out_scal_ref[...] = jnp.dot(
        scal_ref[...], ws_ref[...], preferred_element_type=jnp.float32
    ).astype(out_scal_ref.dtype)


def _build_fused_vector_weight(wv):
    """wv: (dim_out, 2C) nn.Linear weight.  Returns (2C, 2*dim_out) W_big such that
    [v0|v1] @ W_big == [o0|o1] with o0 = v0@Wa - v1@Wb, o1 = v0@Wb + v1@Wa
    (exactly the concat((vector, orth)) @ wv.T of the PyTorch module)."""
    dim_out, dim_in = wv.shape
    C = dim_in // 2
    wvT = wv.T                                   # (2C, dim_out)
    Wa = wvT[:C]                                 # acts on the original vector rows
    Wb = wvT[C:]                                 # acts on the orthogonal rows
    top = jnp.concatenate([Wa, Wb], axis=1)      # contribution of v0
    bot = jnp.concatenate([-Wb, Wa], axis=1)     # contribution of v1
    return jnp.concatenate([top, bot], axis=0)   # (2C, 2*dim_out)


def _block_diag_repeat(W, P):
    """P-way block-diagonal copy of W (tiny; constant-folded under jit)."""
    if P == 1:
        return W
    return jnp.kron(jnp.eye(P, dtype=W.dtype), W)


def _pick_pack_factor(M, widths, dtype):
    """How many logical rows to pack per physical (lane) row."""
    min_w = min(widths)
    if min_w >= 128:
        return 1  # already lane-dense; packing would only bloat the weight
    prefer = (8, 4, 2, 1) if dtype == jnp.bfloat16 else (4, 2, 1)
    for P in prefer:
        if M % P == 0:
            return P
    return 1


def vn_linear(vector, scalar, wv, ws, *, tile_m=4096):
    """vector: (..., 2, C); scalar: (..., S_in); wv: (dim_out, 2*C); ws: (S_out, S_in).

    Weight re-packing (transpose + orth-fold + block-diag) is cheap and constant-folded
    under jit; if calling eagerly in a loop, hoist the packed weights out.
    """
    *lead, two, C = vector.shape
    assert two == 2
    S_in = scalar.shape[-1]
    assert tuple(scalar.shape[:-1]) == tuple(lead)
    dim_out, dim_in = wv.shape
    assert dim_in == 2 * C
    S_out, ws_in = ws.shape
    assert ws_in == S_in

    M = 1
    for d in lead:
        M *= d

    widths = (2 * C, S_in, 2 * dim_out, S_out)
    P = _pick_pack_factor(M, widths, vector.dtype)
    M_p = M // P

    # Lane-dense packing: row = [v0 | v1] of P consecutive logical rows (contiguous reshape).
    vec_p = vector.reshape(M_p, P * 2 * C)
    scal_p = scalar.reshape(M_p, P * S_in)

    wv_big = _block_diag_repeat(_build_fused_vector_weight(wv), P).astype(vector.dtype)
    ws_big = _block_diag_repeat(ws.T, P).astype(scalar.dtype)

    # Tile the packed row dimension.  `tile_m` counts un-packed logical rows.
    desired = max(16, tile_m // P)
    if M_p <= 32:
        tm = M_p                                  # single full block (legal at any size)
    else:
        half = (M_p + 1) // 2                     # keep >=2 grid steps for megacore
        tm = min(_round_up(min(desired, half), 16), M_p)
    grid = (pl.cdiv(M_p, tm),)                    # ragged trailing block handled by Pallas

    out_vec_p, out_scal_p = pl.pallas_call(
        _vnlinear_kernel,
        out_shape=(
            jax.ShapeDtypeStruct((M_p, P * 2 * dim_out), vector.dtype),
            jax.ShapeDtypeStruct((M_p, P * S_out), scalar.dtype),
        ),
        grid_spec=pltpu.PrefetchScalarGridSpec(
            num_scalar_prefetch=0,
            grid=grid,
            in_specs=[
                pl.BlockSpec((tm, P * 2 * C), lambda i: (i, 0)),
                pl.BlockSpec((tm, P * S_in), lambda i: (i, 0)),
                pl.BlockSpec((P * 2 * C, P * 2 * dim_out), lambda i: (0, 0)),  # grid-constant
                pl.BlockSpec((P * S_in, P * S_out), lambda i: (0, 0)),         # grid-constant
            ],
            out_specs=[
                pl.BlockSpec((tm, P * 2 * dim_out), lambda i: (i, 0)),
                pl.BlockSpec((tm, P * S_out), lambda i: (i, 0)),
            ],
        ),
        compiler_params=pltpu.CompilerParams(
            dimension_semantics=("parallel",),
            vmem_limit_bytes=32 * 1024 * 1024,
        ),
    )(vec_p, scal_p, wv_big, ws_big)

    out_vec = out_vec_p.reshape(*lead, 2, dim_out)
    out_scal = out_scal_p.reshape(*lead, S_out)
    return out_vec, out_scal


if __name__ == "__main__":
    key = jax.random.PRNGKey(0)
    k1, k2, k3, k4 = jax.random.split(key, 4)

    # VNLinear(dim_in=32, dim_out=32, scalar_dim_in=32, scalar_dim_out=32)
    B, N = 2, 8
    dim_in, dim_out = 32, 32
    scalar_dim_in, scalar_dim_out = 32, 32
    C = dim_in // 2  # vector last-dim so that concat with its orthogonal gives dim_in

    vector = jax.random.normal(k1, (B, N, 2, C), dtype=jnp.float32)
    scalar = jax.random.normal(k2, (B, N, scalar_dim_in), dtype=jnp.float32)

    # nn.Linear weight shape = (out_features, in_features), bias=False.
    wv = jax.random.normal(k3, (dim_out, dim_in), dtype=jnp.float32) / jnp.sqrt(dim_in)
    ws = jax.random.normal(k4, (scalar_dim_out, scalar_dim_in), dtype=jnp.float32) / jnp.sqrt(
        scalar_dim_in)

    # ---------------- float32 run (P=4 lane packing) + strict reference check ----------------
    out_vec, out_scal = jax.block_until_ready(vn_linear(vector, scalar, wv, ws))

    orth = jnp.concatenate([-vector[..., 1:2, :], vector[..., 0:1, :]], axis=-2)
    ref_vec = jnp.concatenate([vector, orth], axis=-1) @ wv.T
    ref_scal = scalar @ ws.T
    assert out_vec.shape == (B, N, 2, dim_out)
    assert out_scal.shape == (B, N, scalar_dim_out)
    assert jnp.allclose(out_vec, ref_vec, atol=1e-4, rtol=1e-4)
    assert jnp.allclose(out_scal, ref_scal, atol=1e-4, rtol=1e-4)

    # ------------- bfloat16 I/O run (P=8 packing, halved HBM bytes, f32 accumulation) -------------
    v16, s16 = vector.astype(jnp.bfloat16), scalar.astype(jnp.bfloat16)
    wv16, ws16 = wv.astype(jnp.bfloat16), ws.astype(jnp.bfloat16)
    ov16, os16 = jax.block_until_ready(vn_linear(v16, s16, wv16, ws16))

    v16f = v16.astype(jnp.float32)
    orth16 = jnp.concatenate([-v16f[..., 1:2, :], v16f[..., 0:1, :]], axis=-2)
    ref_vec16 = jnp.concatenate([v16f, orth16], axis=-1) @ wv16.astype(jnp.float32).T
    ref_scal16 = s16.astype(jnp.float32) @ ws16.astype(jnp.float32).T
    assert ov16.shape == (B, N, 2, dim_out)
    assert os16.shape == (B, N, scalar_dim_out)
    assert jnp.allclose(ov16.astype(jnp.float32), ref_vec16, atol=6e-2, rtol=6e-2)
    assert jnp.allclose(os16.astype(jnp.float32), ref_scal16, atol=6e-2, rtol=6e-2)

    print("KERNEL_OK")
</pallas_src>

<mosaic_0001>
module attributes {stable_mosaic.version = 11 : i64} {
  func.func @_vnlinear_kernel(%arg0: i32, %arg1: memref<4x128xf32, #tpu.memory_space<vmem>>, %arg2: memref<4x128xf32, #tpu.memory_space<vmem>>, %arg3: memref<128x256xf32, #tpu.memory_space<vmem>>, %arg4: memref<128x128xf32, #tpu.memory_space<vmem>>, %arg5: memref<4x256xf32, #tpu.memory_space<vmem>>, %arg6: memref<4x128xf32, #tpu.memory_space<vmem>>) attributes {dimension_semantics = [#tpu.dimension_semantics<parallel>], iteration_bounds = array<i64: 1>, scalar_prefetch = 0 : i64, scratch_operands = 0 : i64, tpu.core_type = #tpu.core_type<tc>, window_params = [{transform_indices = @transform_0, window_bounds = array<i64: 4, 128>}, {transform_indices = @transform_1, window_bounds = array<i64: 4, 128>}, {pipeline_mode = #tpu.pipeline_mode<synchronous>, transform_indices = @transform_2, window_bounds = array<i64: 128, 256>}, {pipeline_mode = #tpu.pipeline_mode<synchronous>, transform_indices = @transform_3, window_bounds = array<i64: 128, 128>}, {transform_indices = @transform_4, window_bounds = array<i64: 4, 256>}, {transform_indices = @transform_5, window_bounds = array<i64: 4, 128>}]} {
    %c0 = arith.constant 0 : index
    %c0_0 = arith.constant 0 : index
    %0 = vector.load %arg1[%c0, %c0_0] : memref<4x128xf32, #tpu.memory_space<vmem>>, vector<4x128xf32>
    %c0_1 = arith.constant 0 : index
    %c0_2 = arith.constant 0 : index
    %1 = vector.load %arg3[%c0_1, %c0_2] : memref<128x256xf32, #tpu.memory_space<vmem>>, vector<128x256xf32>
    %cst = arith.constant dense<0.000000e+00> : vector<4x256xf32>
    %2 = tpu.matmul %0, %1, %cst {dimension_numbers = #tpu.dot_dimension_numbers<[1], [0], [0], [1], [0, 0, 1, 1], [], []>} : vector<4x128xf32>, vector<128x256xf32>, vector<4x256xf32> -> vector<4x256xf32>
    %c0_3 = arith.constant 0 : index
    %c0_4 = arith.constant 0 : index
    %3 = vector.load %arg5[%c0_3, %c0_4] : memref<4x256xf32, #tpu.memory_space<vmem>>, vector<4x256xf32>
    tpu.vector_store %arg5[%c0_3, %c0_4], %2 {strides = array<i32>} : memref<4x256xf32, #tpu.memory_space<vmem>>, vector<4x256xf32>,
    %c0_5 = arith.constant 0 : index
    %c0_6 = arith.constant 0 : index
    %4 = vector.load %arg2[%c0_5, %c0_6] : memref<4x128xf32, #tpu.memory_space<vmem>>, vector<4x128xf32>
    %c0_7 = arith.constant 0 : index
    %c0_8 = arith.constant 0 : index
    %5 = vector.load %arg4[%c0_7, %c0_8] : memref<128x128xf32, #tpu.memory_space<vmem>>, vector<128x128xf32>
    %cst_9 = arith.constant dense<0.000000e+00> : vector<4x128xf32>
    %6 = tpu.matmul %4, %5, %cst_9 {dimension_numbers = #tpu.dot_dimension_numbers<[1], [0], [0], [1], [0, 0, 1, 1], [], []>} : vector<4x128xf32>, vector<128x128xf32>, vector<4x128xf32> -> vector<4x128xf32>
    %c0_10 = arith.constant 0 : index
    %c0_11 = arith.constant 0 : index
    %7 = vector.load %arg6[%c0_10, %c0_11] : memref<4x128xf32, #tpu.memory_space<vmem>>, vector<4x128xf32>
    tpu.vector_store %arg6[%c0_10, %c0_11], %6 {strides = array<i32>} : memref<4x128xf32, #tpu.memory_space<vmem>>, vector<4x128xf32>,
    return
  }
  func.func @transform_0(%arg0: i32) -> (i32, i32) {
    %c0_i32 = arith.constant 0 : i32
    %c0_i32_0 = arith.constant 0 : i32
    return %arg0, %c0_i32 : i32, i32
  }
  func.func @transform_1(%arg0: i32) -> (i32, i32) {
    %c0_i32 = arith.constant 0 : i32
    %c0_i32_0 = arith.constant 0 : i32
    return %arg0, %c0_i32 : i32, i32
  }
  func.func @transform_2(%arg0: i32) -> (i32, i32) {
    %c0_i32 = arith.constant 0 : i32
    %c0_i32_0 = arith.constant 0 : i32
    %c0_i32_1 = arith.constant 0 : i32
    return %c0_i32, %c0_i32_0 : i32, i32
  }
  func.func @transform_3(%arg0: i32) -> (i32, i32) {
    %c0_i32 = arith.constant 0 : i32
    %c0_i32_0 = arith.constant 0 : i32
    %c0_i32_1 = arith.constant 0 : i32
    return %c0_i32, %c0_i32_0 : i32, i32
  }
  func.func @transform_4(%arg0: i32) -> (i32, i32) {
    %c0_i32 = arith.constant 0 : i32
    %c0_i32_0 = arith.constant 0 : i32
    return %arg0, %c0_i32 : i32, i32
  }
  func.func @transform_5(%arg0: i32) -> (i32, i32) {
    %c0_i32 = arith.constant 0 : i32
    %c0_i32_0 = arith.constant 0 : i32
    return %arg0, %c0_i32 : i32, i32
  }
}

</mosaic_0001>

<bundles_post_ra>
// kernel: tpu_custom_call.1
= control target key start
LH: loop header
LB: loop body
LE: loop exit
PB: predicated region body
PF: predicated region fallthrough
CT: control target
= control target key end

     0   :  { %11 = vsyncpa [#allocation3], 0  ;;  %s455_s0 = inlined_call_operand.hbm [shape: f32[4,128], index: 0, kind: input, shape index: {}]   ;;  %s456_s1 = inlined_call_operand.hbm [shape: f32[4,128], index: 1, kind: input, shape index: {}]   ;;  %s457_s2 = inlined_call_operand.hbm [shape: f32[128,256], index: 2, kind: input, shape index: {}]   ;;  %s458_s3 = inlined_call_operand.hbm [shape: f32[128,128], index: 3, kind: input, shape index: {}]   ;;  %s459_s4 = inlined_call_operand.hbm [shape: f32[4,256], index: 4, kind: output, shape index: {0}]   ;;  %s460_s5 = inlined_call_operand.hbm [shape: f32[4,128], index: 5, kind: output, shape index: {1}]  }
   0x1   :  { %12 = vsyncpa [#allocation6], 0 }
   0x2   :  { %13 = vsyncpa [#allocation9], 0 }
   0x3   :  { %14 = vsyncpa [#allocation4], 0  ;;  %s32_s20 = sshll.u32 %s456_s1, 4  ;;  %s33_s20 = int_to_ptr.hbm [resolvable:$true] %s32_s20 }
   0x4   :  { %15 = vsyncpa [#allocation12], 0  ;;  %s397_s21 = smov [#allocation5]   ;;  %s21_s25 = sshll.u32 %s455_s0, 4  ;;  %s22_s25 = int_to_ptr.hbm [resolvable:$true] %s21_s25 }
   0x5   :  { %s34_s22 = sshll.u32 %s397_s21, 4  ;;  %s398_s26 = smov [#allocation2]   ;;  %s35_s22 = int_to_ptr.vmem [resolvable:$true] %s34_s22 }
   0x6   :  { %37 = dma.hbm_to_vmem [thread:$0]  %s33_s20, 64, %s35_s22, [#allocation6]  }
   0x7   :  { %s23_s27 = sshll.u32 %s398_s26, 4  ;;  %s42_s30 = sshll.u32 %s457_s2, 4  ;;  %s24_s27 = int_to_ptr.vmem [resolvable:$true] %s23_s27  ;;  %s43_s30 = int_to_ptr.hbm [resolvable:$true] %s42_s30 }
   0x8   :  { %26 = dma.hbm_to_vmem [thread:$0]  %s22_s25, 64, %s24_s27, [#allocation3]  }
   0x9   :  { %s399_s1 = smov [#allocation7]   ;;  %s55_s9 = sshll.u32 %s458_s3, 4  ;;  %s56_s9 = int_to_ptr.hbm [resolvable:$true] %s55_s9 }
   0xa   :  { %s44_s6 = sshll.u32 %s399_s1, 4  ;;  %s400_s10 = smov 256   ;;  %s45_s6 = int_to_ptr.vmem [resolvable:$true] %s44_s6 }
   0xb   :  { %s401_s0 = smov 16   ;;  %s402_s11 = smov [#allocation8]  }
   0xc   :  { %50 = dma.hbm_to_vmem [thread:$0]  %s43_s30, 4096, %s45_s6, [#allocation6], %s400_s10, %s400_s10, %s401_s0  }
   0xd   :  { %s57_s12 = sshll.u32 %s402_s11, 4  ;;  %s403_s13 = smov 128   ;;  %s58_s12 = int_to_ptr.vmem [resolvable:$true] %s57_s12 }
   0xe   :  { %s404_s14 = smov 8  }
   0xf   :  { %63 = dma.hbm_to_vmem [thread:$0]  %s56_s9, 2048, %s58_s12, [#allocation9], %s403_s13, %s403_s13, %s404_s14  }
  0x10   :  { %387 = dma.done.wait [#allocation3], 64  }
  0x11   :  { %388 = vsyncadd [#allocation3], 4294967232 }
  0x12   :  { %389 = dma.done.wait [#allocation6], 4160  }
  0x13   :  { %390 = vsyncadd [#allocation6], 4294963136 }
  0x14   :  { %391 = dma.done.wait [#allocation9], 2048  }
  0x15   :  { %392 = vsyncadd [#allocation9], 4294965248  ;;  %v176_v0 = vld [vmem:[#allocation8 + $0x78] sm:$0xff]  ;;  %v175_v1 = vld [vmem:[#allocation8 + $0x70] sm:$0xff]  ;;  %s405_s2 = smov [#allocation10]   ;;  %s205_s17 = sshll.u32 %s459_s4, 4  ;;  %s206_s17 = int_to_ptr.hbm [resolvable:$true] %s205_s17 }
  0x16   :  { %v112_v2 = vld [vmem:[#allocation7 + $0xf8] sm:$0xff]  ;;  %177 = vmatpush.msra.mxu2 %v176_v0  ;;  %v111_v3 = vld [vmem:[#allocation7 + $0xf0] sm:$0xff]  ;;  %v110_v4 = vld [vmem:[#allocation7 + $0xe8] sm:$0xff]  ;;  %s203_s3 = sshll.u32 %s405_s2, 4  ;;  %vm156_vm0 = vcmask 1043456   ;;  %s406_s18 = smov [#allocation11]   ;;  %s204_s3 = int_to_ptr.vmem [resolvable:$true] %s203_s3 }
  0x17   :  { %133 = vmatpush.msra.mxu1 %v112_v2  ;;  %v174_v5 = vld [vmem:[#allocation8 + $0x68] sm:$0xff]  ;;  %113 = vmatpush.msra.mxu0 %v111_v3  ;;  %v109_v6 = vld [vmem:[#allocation7 + $0xe0] sm:$0xff]  ;;  %v108_v7 = vld [vmem:[#allocation7 + $0xd8] sm:$0xff]  ;;  %s214_s19 = sshll.u32 %s406_s18, 4  ;;  %s216_s22 = sshll.u32 %s460_s5, 4  ;;  %s215_s19 = int_to_ptr.vmem [resolvable:$true] %s214_s19  ;;  %s217_s22 = int_to_ptr.hbm [resolvable:$true] %s216_s22 }
  0x18   :  { %178 = vmatpush.msra.mxu2 %v175_v1  ;;  %v107_v8 = vld [vmem:[#allocation7 + $0xd0] sm:$0xff]  ;;  %v173_v9 = vld [vmem:[#allocation8 + $0x60] sm:$0xff]  ;;  %v106_v10 = vld [vmem:[#allocation7 + $0xc8] sm:$0xff] }
  0x19   :  { %134 = vmatpush.msra.mxu1 %v110_v4  ;;  %114 = vmatpush.msra.mxu0 %v109_v6  ;;  %v105_v11 = vld [vmem:[#allocation7 + $0xc0] sm:$0xff]  ;;  %v172_v12 = vld [vmem:[#allocation8 + $0x58] sm:$0xff]  ;;  %v103_v14 = vld [vmem:[#allocation7 + $0xb0] sm:$0xff] }
  0x1a   :  { %179 = vmatpush.msra.mxu2 %v174_v5  ;;  %v104_v13 = vld [vmem:[#allocation7 + $0xb8] sm:$0xff]  ;;  %v171_v15 = vld [vmem:[#allocation8 + $0x50] sm:$0xff]  ;;  %v102_v16 = vld [vmem:[#allocation7 + $0xa8] sm:$0xff] }
  0x1b   :  { %135 = vmatpush.msra.mxu1 %v108_v7  ;;  %115 = vmatpush.msra.mxu0 %v107_v8  ;;  %v101_v17 = vld [vmem:[#allocation7 + $0xa0] sm:$0xff]  ;;  %v170_v18 = vld [vmem:[#allocation8 + $0x48] sm:$0xff]  ;;  %v100_v19 = vld [vmem:[#allocation7 + $0x98] sm:$0xff] }
  0x1c   :  { %180 = vmatpush.msra.mxu2 %v173_v9  ;;  %v99_v20 = vld [vmem:[#allocation7 + $0x90] sm:$0xff]  ;;  %v169_v21 = vld [vmem:[#allocation8 + $0x40] sm:$0xff]  ;;  %v98_v22 = vld [vmem:[#allocation7 + $0x88] sm:$0xff] }
  0x1d   :  { %136 = vmatpush.msra.mxu1 %v106_v10  ;;  %116 = vmatpush.msra.mxu0 %v105_v11  ;;  %v97_v23 = vld [vmem:[#allocation7 + $0x80] sm:$0xff]  ;;  %v168_v24 = vld [vmem:[#allocation8 + $0x38] sm:$0xff]  ;;  %v95_v26 = vld [vmem:[#allocation7 + $0x70] sm:$0xff] }
  0x1e   :  { %181 = vmatpush.msra.mxu2 %v172_v12  ;;  %v96_v25 = vld [vmem:[#allocation7 + $0x78] sm:$0xff]  ;;  %v167_v27 = vld [vmem:[#allocation8 + $0x30] sm:$0xff]  ;;  %v94_v28 = vld [vmem:[#allocation7 + $0x68] sm:$0xff] }
  0x1f   :  { %137 = vmatpush.msra.mxu1 %v104_v13  ;;  %117 = vmatpush.msra.mxu0 %v103_v14  ;;  %v93_v29 = vld [vmem:[#allocation7 + $0x60] sm:$0xff]  ;;  %v166_v30 = vld [vmem:[#allocation8 + $0x28] sm:$0xff]  ;;  %v92_v31 = vld [vmem:[#allocation7 + $0x58] sm:$0xff] }
  0x20   :  { %182 = vmatpush.msra.mxu2 %v171_v15  ;;  %v91_v32 = vld [vmem:[#allocation7 + $0x50] sm:$0xff]  ;;  %v165_v33 = vld [vmem:[#allocation8 + $0x20] sm:$0xff]  ;;  %v90_v34 = vld [vmem:[#allocation7 + $0x48] sm:$0xff] }
  0x21   :  { %138 = vmatpush.msra.mxu1 %v102_v16  ;;  %118 = vmatpush.msra.mxu0 %v101_v17  ;;  %v89_v35 = vld [vmem:[#allocation7 + $0x40] sm:$0xff]  ;;  %v164_v36 = vld [vmem:[#allocation8 + $0x18] sm:$0xff]  ;;  %v87_v38 = vld [vmem:[#allocation7 + $0x30] sm:$0xff] }
  0x22   :  { %183 = vmatpush.msra.mxu2 %v170_v18  ;;  %v88_v37 = vld [vmem:[#allocation7 + $0x38] sm:$0xff]  ;;  %v163_v39 = vld [vmem:[#allocation8 + $0x10] sm:$0xff]  ;;  %v86_v40 = vld [vmem:[#allocation7 + $0x28] sm:$0xff] }
  0x23   :  { %139 = vmatpush.msra.mxu1 %v100_v19  ;;  %119 = vmatpush.msra.mxu0 %v99_v20  ;;  %v85_v41 = vld [vmem:[#allocation7 + $0x20] sm:$0xff]  ;;  %v162_v42 = vld [vmem:[#allocation8 + $0x8] sm:$0xff]  ;;  %v84_v43 = vld [vmem:[#allocation7 + $0x18] sm:$0xff] }
  0x24   :  { %184 = vmatpush.msra.mxu2 %v169_v21  ;;  %v83_v44 = vld [vmem:[#allocation7 + $0x10] sm:$0xff]  ;;  %v161_v45 = vld [vmem:[#allocation8] sm:$0xff]  ;;  %v82_v46 = vld [vmem:[#allocation7 + $0x8] sm:$0xff] }
  0x25   :  { %140 = vmatpush.msra.mxu1 %v98_v22  ;;  %120 = vmatpush.msra.mxu0 %v97_v23  ;;  %v160_v47 = vld [vmem:[#allocation5] sm:$0xf]  ;;  %v80_v48 = vld [vmem:[#allocation2] sm:$0xf]  ;;  %v81_v49 = vld [vmem:[#allocation7] sm:$0xff] }
  0x26   :  { %185 = vmatpush.msra.mxu2 %v168_v24 }
  0x27   :  { %141 = vmatpush.msra.mxu1 %v96_v25  ;;  %121 = vmatpush.msra.mxu0 %v95_v26 }
  0x28   :  { %186 = vmatpush.msra.mxu2 %v167_v27 }
  0x29   :  { %142 = vmatpush.msra.mxu1 %v94_v28  ;;  %122 = vmatpush.msra.mxu0 %v93_v29 }
  0x2a   :  { %187 = vmatpush.msra.mxu2 %v166_v30 }
  0x2b   :  { %143 = vmatpush.msra.mxu1 %v92_v31  ;;  %123 = vmatpush.msra.mxu0 %v91_v32 }
  0x2c   :  { %188 = vmatpush.msra.mxu2 %v165_v33 }
  0x2d   :  { %144 = vmatpush.msra.mxu1 %v90_v34  ;;  %124 = vmatpush.msra.mxu0 %v89_v35 }
  0x2e   :  { %189 = vmatpush.msra.mxu2 %v164_v36 }
  0x2f   :  { %145 = vmatpush.msra.mxu1 %v88_v37  ;;  %125 = vmatpush.msra.mxu0 %v87_v38 }
  0x30   :  { %190 = vmatpush.msra.mxu2 %v163_v39 }
  0x31   :  { %146 = vmatpush.msra.mxu1 %v86_v40  ;;  %126 = vmatpush.msra.mxu0 %v85_v41 }
  0x32   :  { %191 = vmatpush.msra.mxu2 %v162_v42 }
  0x33   :  { %147 = vmatpush.msra.mxu1 %v84_v43  ;;  %127 = vmatpush.msra.mxu0 %v83_v44 }
  0x34   :  { %192 = vmatpush.msra.mxu2 %v161_v45 }
  0x35   :  { %148 = vmatpush.msra.mxu1 %v82_v46  ;;  %193 = vmatmul.f32.vlgmr.msra.gmra.mxu2 %v160_v47 }
  0x36   :  { %149 = vmatmul.f32.vlgmr.msra.gmra.mxu1 %v80_v48  ;;  %128 = vmatpush.msra.mxu0 %v81_v49 }
  0x37   :  { %129 = vmatmul.f32.vlgmr.msra.gmra.mxu0 %v80_v48 }
  0xb3   :  { %v150_v50 = vpop.f32.mrf.mxu1 }
  0xb4   :  { %v155_v51 = vrot.slane %v150_v50, 4  ;;  %v130_v52 = vpop.f32.mrf.mxu0 }
  0xb6   :  { %v157_v53 = vsel %vm156_vm0, %v130_v52, %v155_v51 }
  0xb7   :  { %159 = vst [vmem:[#allocation10] sm:$0xff] %v157_v53 }
  0xb8   :  { %208 = dma.vmem_to_hbm [thread:$0]  %s204_s3, 128, %s206_s17, [#allocation4]   ;;  %v194_v54 = vpop.f32.mrf.mxu2 }
  0xb9   :  { %197 = vst [vmem:[#allocation11] sm:$0xf] %v194_v54 }
  0xba   :  { %219 = dma.vmem_to_hbm [thread:$0]  %s215_s19, 64, %s217_s22, [#allocation12]  }
  0xbb   :  { %393 = dma.done.wait [#allocation4], 128  }
  0xbc   :  { %394 = vsyncadd [#allocation4], 4294967168 }
  0xbd   :  { %395 = dma.done.wait [#allocation12], 64  }
  0xbe   :  { %396 = vsyncadd [#allocation12], 4294967232 }
  0xbf   :  { %228 = vsyncpa [#allocation3], 1 }
  0xc0   :  { %229 = vsyncpa [#allocation6], 1 }
  0xc1   :  { %230 = vsyncpa [#allocation9], 1 }
  0xc2   :  { %231 = vsyncpa [#allocation4], 1 }
  0xc3   :  { %232 = vsyncpa [#allocation12], 1 }

</bundles_post_ra>
